<compile_context>
chip_gen: v7x
topology: tpu7x:2x2x1
jax: 0.10.0
libtpu: 0.0.40
codegen_flags: <defaults>
</compile_context>

<pallas_src>
import functools

import jax
import jax.numpy as jnp
import numpy as np
from jax.experimental import pallas as pl
from jax.experimental.pallas import tpu as pltpu


def _embedding_gather_kernel(ids_ref, table_ref, out_ref, *, vocab_chunk):
    """Gather one tile of token embeddings with a single one-hot MXU matmul.

    ids_ref:   (T, 1) int32 token ids, already permuted by the wrapper so that
               kernel row g*rows + r corresponds to natural token r*G + g.
    table_ref: (V, E_out) embedding table (both tables pre-concatenated for
               op='c'), resident in VMEM.
    out_ref:   (rows, G * E_out) output block; lane block g of row r holds the
               embedding of natural token r*G + g.
    """
    T = ids_ref.shape[0]
    V, E_out = table_ref.shape
    rows, out_w = out_ref.shape
    G = out_w // E_out
    tdtype = table_ref.dtype

    ids = ids_ref[...]                                        # (T, 1) int32

    n_chunks = -(-V // vocab_chunk)                           # static python
    if n_chunks == 1:
        # Single matmul: (T, V) @ (V, E_out).  Exact gather (one 1.0 per row).
        col = jax.lax.broadcasted_iota(jnp.int32, (T, V), 1)
        onehot = (col == ids).astype(tdtype)
        gathered = jnp.dot(onehot, table_ref[...],
                           preferred_element_type=jnp.float32)
    else:
        # V-chunked accumulate: bounds the (T, chunk) one-hot scratch for
        # larger vocabularies (static unrolled loop; table slice is static).
        gathered = jnp.zeros((T, E_out), jnp.float32)
        col_full = jax.lax.broadcasted_iota(jnp.int32, (T, vocab_chunk), 1)
        for c in range(n_chunks):
            start = c * vocab_chunk
            size = min(vocab_chunk, V - start)
            col = (col_full if size == vocab_chunk
                   else jax.lax.broadcasted_iota(jnp.int32, (T, size), 1))
            onehot = ((col + start) == ids).astype(tdtype)
            gathered = gathered + jnp.dot(
                onehot, table_ref[pl.ds(start, size), :],
                preferred_element_type=jnp.float32)

    if G == 1:
        out_ref[...] = gathered.astype(out_ref.dtype)
    else:
        # Pack G row-groups side by side along lanes -> 128-lane-dense store.
        pieces = [gathered[g * rows:(g + 1) * rows, :] for g in range(G)]
        out_ref[...] = jnp.concatenate(pieces, axis=-1).astype(out_ref.dtype)


def _vmem_capacity_bytes(default=64 * 1024 * 1024):
    """Per-TensorCore VMEM capacity (conservative v7x default on failure)."""
    try:
        cap = getattr(pltpu.get_tpu_info(), "vmem_capacity_bytes", None)
        if cap:
            return int(cap)
    except Exception:
        pass
    return default


def word_embedding_forward(x, emb_weight, emb_c_weight=None, *,
                           tile_tokens=1024, vocab_chunk=2048):
    """Pallas implementation of WordEmbedding.forward (eval mode).

    x:            [B, S] int32 token ids in [0, ntoken] (ntoken == padding_idx)
    emb_weight:   [ntoken+1, emb_dim]
    emb_c_weight: optional [ntoken+1, emb_dim] (the 'c' branch, frozen table)
    returns:      [B, S, emb_dim] or [B, S, 2*emb_dim]
    """
    B, S = x.shape
    N = B * S
    V, E = emb_weight.shape

    # Fuse op='c' by pre-concatenating the two tables into one RHS.
    if emb_c_weight is not None:
        assert emb_c_weight.shape == (V, E)
        table = jnp.concatenate([emb_weight, emb_c_weight], axis=1)
    else:
        table = emb_weight
    E_out = int(table.shape[1])
    out_dtype = emb_weight.dtype
    itemsize = jnp.dtype(out_dtype).itemsize

    # Lane packing factor: pack G tokens per stored row so the stored row
    # width is a multiple of 128 lanes (unmasked vst).
    if E_out < 128 and 128 % E_out == 0:
        G = 128 // E_out
    else:
        G = 1
    unit = 8 * G                       # keeps the output sublane dim % 8 == 0

    # Tokens per grid step; collapse to a single step for small inputs.
    N_ceil = -(-N // unit) * unit
    T = max(int(tile_tokens), unit)
    T -= T % unit
    T = min(T, N_ceil)
    rows = T // G
    num_tiles = -(-N // T)
    N_pad = num_tiles * T

    # ---- VMEM accounting (per TensorCore; "parallel" replicates the table
    # on v7x's two cores, so the budget is per-core by construction). ----
    Vc_eff = min(V, int(vocab_chunk))
    est = (
        V * E_out * itemsize * 2            # resident table (auto double-buffered)
        + T * 4 * 2                         # ids block x2
        + rows * G * E_out * itemsize * 2   # output block x2
        + T * Vc_eff * (itemsize + 4)       # one-hot + iota scratch
        + T * E_out * 4 * 2                 # gathered / packing temporaries
    )
    vmem_cap = _vmem_capacity_bytes()
    vmem_limit = max(32 << 20, 2 * est + (4 << 20))
    vmem_limit = min(vmem_limit, (vmem_cap * 3) // 4)
    if est + (2 << 20) > vmem_limit:
        # TODO(synk): large-vocab fallback (single-buffered / streamed table
        # via manual make_async_copy row gathers) not implemented.
        raise NotImplementedError(
            f"WordEmbedding pallas kernel: estimated VMEM use {est} B exceeds "
            f"per-core budget {vmem_limit} B (capacity {vmem_cap} B)")

    # ---- Token id preparation (cheap: 4 B/token). ----
    # Pad with the padding_idx row (zeros); padded rows are sliced off below.
    # With the one-hot gather an out-of-range id yields an all-zero row.
    pad_id = V - 1
    flat = jnp.pad(x.reshape(N).astype(jnp.int32), (0, N_pad - N),
                   constant_values=pad_id)
    # Per-tile permutation: kernel row g*rows + r <- natural token r*G + g,
    # so the kernel's contiguous-row-group lane packing yields an output whose
    # flat layout is already in natural token order (free reshape below).
    ids_k = (flat.reshape(num_tiles, rows, G)
                 .transpose(0, 2, 1)
                 .reshape(N_pad, 1))

    ids_spec = pl.BlockSpec((T, 1), lambda i: (i, 0))
    # Full-array block + constant index_map -> table DMA'd into VMEM once and
    # re-used across all grid steps.
    table_spec = pl.BlockSpec((V, E_out), lambda i: (0, 0))
    out_spec = pl.BlockSpec((rows, G * E_out), lambda i: (i, 0))

    out = pl.pallas_call(
        functools.partial(_embedding_gather_kernel, vocab_chunk=int(vocab_chunk)),
        out_shape=jax.ShapeDtypeStruct((num_tiles * rows, G * E_out), out_dtype),
        grid_spec=pltpu.PrefetchScalarGridSpec(
            num_scalar_prefetch=0,
            grid=(num_tiles,),
            in_specs=[ids_spec, table_spec],
            out_specs=out_spec,
        ),
        compiler_params=pltpu.CompilerParams(
            dimension_semantics=("parallel",),       # token tiles independent
            vmem_limit_bytes=int(vmem_limit)),
    )(ids_k, table)

    # (num_tiles*rows, G*E_out) and (N_pad, E_out) share the same flat layout,
    # so this reshape is a free view; then drop the padded tokens.
    emb = out.reshape(N_pad, E_out)[:N].reshape(B, S, E_out)

    # self.dropout(emb): identity in eval mode.
    return emb


def make_embedding_weight(key, ntoken, emb_dim, dtype=jnp.float32):
    """nn.Embedding(ntoken+1, emb_dim, padding_idx=ntoken): N(0,1) init,
    padding row zeroed."""
    w = jax.random.normal(key, (ntoken + 1, emb_dim), dtype=dtype)
    w = w.at[ntoken].set(0.0)
    return w


if __name__ == "__main__":
    ntoken = 50
    emb_dim = 32

    key = jax.random.PRNGKey(0)
    k_w, k_wc, k_ids1, k_ids2 = jax.random.split(key, 4)

    emb_w = make_embedding_weight(k_w, ntoken, emb_dim)
    emb_c_w = make_embedding_weight(k_wc, ntoken, emb_dim)

    # --- op='c' branch: fused [emb | emb_c] output, single tile ---
    B, S = 2, 8
    x = jax.random.randint(k_ids1, (B, S), 0, ntoken + 1, dtype=jnp.int32)
    x = x.at[0, 0].set(ntoken)          # force padding_idx tokens
    x = x.at[1, -1].set(ntoken)

    out_c = jax.block_until_ready(
        jax.jit(word_embedding_forward)(x, emb_w, emb_c_w))
    ref_c = jnp.concatenate(
        [jnp.take(emb_w, x, axis=0), jnp.take(emb_c_w, x, axis=0)], axis=-1)
    assert out_c.shape == (B, S, 2 * emb_dim), out_c.shape
    assert np.allclose(np.asarray(out_c), np.asarray(ref_c), atol=1e-6), \
        "mismatch (op='c')"
    assert float(jnp.abs(out_c[0, 0]).max()) == 0.0
    assert float(jnp.abs(out_c[1, -1]).max()) == 0.0

    # --- op='' branch: small tile -> 3 tiles over 300 tokens (pads last tile) ---
    B2, S2 = 3, 100
    x2 = jax.random.randint(k_ids2, (B2, S2), 0, ntoken + 1, dtype=jnp.int32)
    fwd_small_tile = jax.jit(
        functools.partial(word_embedding_forward, tile_tokens=128))
    out1 = jax.block_until_ready(fwd_small_tile(x2, emb_w))
    ref1 = jnp.take(emb_w, x2, axis=0)
    assert out1.shape == (B2, S2, emb_dim), out1.shape
    assert np.allclose(np.asarray(out1), np.asarray(ref1), atol=1e-6), \
        "mismatch (op='', multi-tile)"

    # --- op='' branch: default auto-sized single tile covering all tokens ---
    out2 = jax.block_until_ready(jax.jit(word_embedding_forward)(x2, emb_w))
    assert np.allclose(np.asarray(out2), np.asarray(ref1), atol=1e-6), \
        "mismatch (op='', single tile)"

    print("KERNEL_OK")
</pallas_src>

<mosaic_0001>
module attributes {stable_mosaic.version = 11 : i64} {
  func.func @_embedding_gather_kernel(%arg0: i32, %arg1: memref<16x1xi32, #tpu.memory_space<vmem>>, %arg2: memref<51x64xf32, #tpu.memory_space<vmem>>, %arg3: memref<8x128xf32, #tpu.memory_space<vmem>>) attributes {dimension_semantics = [#tpu.dimension_semantics<parallel>], iteration_bounds = array<i64: 1>, scalar_prefetch = 0 : i64, scratch_operands = 0 : i64, tpu.core_type = #tpu.core_type<tc>, window_params = [{transform_indices = @transform_0, window_bounds = array<i64: 16, 1>}, {pipeline_mode = #tpu.pipeline_mode<synchronous>, transform_indices = @transform_1, window_bounds = array<i64: 51, 64>}, {transform_indices = @transform_2, window_bounds = array<i64: 8, 128>}]} {
    %c0 = arith.constant 0 : index
    %c0_0 = arith.constant 0 : index
    %0 = vector.load %arg1[%c0, %c0_0] : memref<16x1xi32, #tpu.memory_space<vmem>>, vector<16x1xi32>
    %1 = tpu.iota {dimensions = array<i32: 1>} : vector<16x51xi32>
    %2 = vector.broadcast %0 : vector<16x1xi32> to vector<16x51xi32>
    %3 = arith.cmpi eq, %1, %2 : vector<16x51xi32>
    %4 = arith.extui %3 : vector<16x51xi1> to vector<16x51xi32>
    %5 = arith.sitofp %4 : vector<16x51xi32> to vector<16x51xf32>
    %c0_1 = arith.constant 0 : index
    %c0_2 = arith.constant 0 : index
    %6 = vector.load %arg2[%c0_1, %c0_2] : memref<51x64xf32, #tpu.memory_space<vmem>>, vector<51x64xf32>
    %cst = arith.constant dense<0.000000e+00> : vector<16x64xf32>
    %7 = tpu.matmul %5, %6, %cst {dimension_numbers = #tpu.dot_dimension_numbers<[1], [0], [0], [1], [0, 0, 1, 1], [], []>} : vector<16x51xf32>, vector<51x64xf32>, vector<16x64xf32> -> vector<16x64xf32>
    %8 = vector.extract_strided_slice %7 {offsets = [0, 0], sizes = [8, 64], strides = [1, 1]} : vector<16x64xf32> to vector<8x64xf32>
    %9 = vector.extract_strided_slice %7 {offsets = [8, 0], sizes = [8, 64], strides = [1, 1]} : vector<16x64xf32> to vector<8x64xf32>
    %10 = tpu.concatenate %8, %9 in 1 : vector<8x64xf32>, vector<8x64xf32> -> vector<8x128xf32>
    %c0_3 = arith.constant 0 : index
    %c0_4 = arith.constant 0 : index
    %11 = vector.load %arg3[%c0_3, %c0_4] : memref<8x128xf32, #tpu.memory_space<vmem>>, vector<8x128xf32>
    tpu.vector_store %arg3[%c0_3, %c0_4], %10 {strides = array<i32>} : memref<8x128xf32, #tpu.memory_space<vmem>>, vector<8x128xf32>,
    return
  }
  func.func @transform_0(%arg0: i32) -> (i32, i32) {
    %c0_i32 = arith.constant 0 : i32
    %c0_i32_0 = arith.constant 0 : i32
    return %arg0, %c0_i32 : i32, i32
  }
  func.func @transform_1(%arg0: i32) -> (i32, i32) {
    %c0_i32 = arith.constant 0 : i32
    %c0_i32_0 = arith.constant 0 : i32
    %c0_i32_1 = arith.constant 0 : i32
    return %c0_i32, %c0_i32_0 : i32, i32
  }
  func.func @transform_2(%arg0: i32) -> (i32, i32) {
    %c0_i32 = arith.constant 0 : i32
    %c0_i32_0 = arith.constant 0 : i32
    return %arg0, %c0_i32 : i32, i32
  }
}

</mosaic_0001>

<bundles_post_ra>
// kernel: word_embedding_forward.1
= control target key start
LH: loop header
LB: loop body
LE: loop exit
PB: predicated region body
PF: predicated region fallthrough
CT: control target
= control target key end

     0   :  { %v178_v0 = vmov 0   ;;  %vm41_vm0 = vcmask 1042432   ;;  %v13_v13 = vlaneseq  ;;  %vm34_vm1 = vcmask 416768   ;;  %s226_s0 = inlined_call_operand.vmem [shape: s32[16,1], index: 0, kind: input, shape index: {}]   ;;  %s227_s1 = inlined_call_operand.vmem [shape: f32[51,64], index: 1, kind: input, shape index: {}]   ;;  %s228_s2 = inlined_call_operand.vmem [shape: f32[8,128], index: 2, kind: output, shape index: {}]  }
   0x1   :  { %177 = vset.pattern.permute.xlu0 %v178_v0  ;;  %v11_v1 = vld [vmem:[%s226_s0] sm:$0xff]  ;;  %v28_v3 = vld [vmem:[%s227_s1 + $0x8] sm:$0xff]  ;;  %v29_v4 = vld [vmem:[%s227_s1 + $0x10] sm:$0xff]  ;;  %v179_v16 = vmov 0.0   ;;  %vm124_vm4 = vcmask 523264  }
   0x2   :  { %v27_v2 = vld [vmem:[%s227_s1] sm:$0xff]  ;;  %16 = vperm.xlu0 %177, %v11_v1   ;;  %v30_v5 = vld [vmem:[%s227_s1 + $0x18] sm:$0xff]  ;;  %v12_v6 = vld [vmem:[%s226_s0 + $0x8] sm:$0xff]  ;;  %v14_v14 = vand.u32 127, %v13_v13  ;;  %s180_s0 = smov 64  }
   0x3   :  { %v162_v7 = vpack.c.bf16 %v28_v3, %v27_v2  ;;  %v166_v8 = vpack.c.bf16 %v30_v5, %v29_v4  ;;  %v31_v9 = vld [vmem:[%s227_s1 + $0x20] sm:$0xff]  ;;  %v32_v10 = vld [vmem:[%s227_s1 + $0x28] sm:$0xff]  ;;  %v33_v12 = vld [vmem:[%s227_s1 + $0x30] sm:$0x7] }
   0x4   :  { %v170_v11 = vpack.c.bf16 %v32_v10, %v31_v9 }
   0x5   :  { %163 = vmatprep.subr.bf16.mxu0 %v162_v7 }
   0x6   :  { %19 = vperm.xlu0 %177, %v12_v6   ;;  %165 = vmatpush3.bf16.msra.mxu0 %v162_v7 }
   0x7   :  { %167 = vmatprep.subr.bf16.mxu0 %v166_v8 }
   0xa   :  { %169 = vmatpush3.bf16.msra.mxu0 %v166_v8 }
   0xb   :  { %171 = vmatprep.subr.bf16.mxu0 %v170_v11 }
   0xe   :  { %173 = vmatpush3.bf16.msra.mxu0 %v170_v11 }
   0xf   :  { %157 = vmatprep.subr.msk.mxu0 %vm41_vm0, %v33_v12 }
  0x12   :  { %158 = vmatpush3.msk.msra.mxu0 %vm41_vm0, %v33_v12 }
  0x81   :  { %v17_v15 = vpop.permute.xlu0 %16 }
  0x82   :  { %vm21_vm2 = vcmp.eq.s32.totalorder %v14_v14, %v17_v15 }
  0x83   :  { %v131_v17 = vsel %vm21_vm2, 1.0, %v179_v16 }
  0x84   :  { %159 = vmatprep.mubr.msk.f32.mxu0 %vm34_vm1, %v131_v17 }
  0x85   :  { %v20_v18 = vpop.permute.xlu0 %19 }
  0x86   :  { %vm22_vm3 = vcmp.eq.s32.totalorder %v14_v14, %v20_v18 }
  0x87   :  { %v132_v19 = vsel %vm22_vm3, 1.0, %v179_v16 }
  0x88   :  { %160 = vmatmul.mubr.msk.f32.vlgmr.msra.gmra.mrb[0].mxu0 %vm34_vm1, %v132_v19 }
 0x15b   :  { %v161_v20 = vpop.f32.mrb[0].mxu0 }
 0x15c   :  { %121 = vrot.lane.b32.xlu1 %v161_v20, %s180_s0  ;;  %v111_v21 = vpop.f32.mrb[1].mxu0 }
 0x1ce   :  { %v122_v22 = vpop.permute.xlu1 %121 }
 0x1cf   :  { %v125_v23 = vsel %vm124_vm4, %v111_v21, %v122_v22 }
 0x1d0   :  { %126 = vst [vmem:[%s228_s2] sm:$0xff] %v125_v23 }

</bundles_post_ra>
